<compile_context>
chip_gen: v7x
topology: tpu7x:2x2x1
jax: 0.10.0
libtpu: 0.0.40
codegen_flags: <defaults>
</compile_context>

<pallas_src>
import functools

import jax
import jax.numpy as jnp
from jax import lax
from jax.experimental import pallas as pl
from jax.experimental.pallas import tpu as pltpu


def _ned_kernel(x1_ref, x2_ref, out_ref, *, eps, inv_n, inv_nm1):
    """Per row-tile: unbiased row variances and normalized Euclidean similarity."""
    x1 = x1_ref[...].astype(jnp.float32)                      # (TM, D)
    x2 = x2_ref[...].astype(jnp.float32)                      # (TM, D)

    mu1 = jnp.sum(x1, axis=-1, keepdims=True) * inv_n         # (TM, 1)
    mu2 = jnp.sum(x2, axis=-1, keepdims=True) * inv_n
    c1 = x1 - mu1                                             # centered x1
    c2 = x2 - mu2                                             # centered x2
    cd = c1 - c2                                              # centered (x1 - x2)

    v1 = jnp.sum(c1 * c1, axis=-1, keepdims=True) * inv_nm1   # unbiased variances
    v2 = jnp.sum(c2 * c2, axis=-1, keepdims=True) * inv_nm1
    vd = jnp.sum(cd * cd, axis=-1, keepdims=True) * inv_nm1

    # sqrt(0.5*vd / (v1 + v2 + eps)) == sqrt(0.5*vd) * rsqrt(v1 + v2 + eps)  (EUP)
    ned = jnp.sqrt(0.5 * vd) * lax.rsqrt(v1 + v2 + eps)
    out_ref[...] = ned.astype(out_ref.dtype)


def _round_up(x, m):
    return (x + m - 1) // m * m


def _choose_block_rows(rows, d, itemsize, target_bytes=8 << 20, max_rows=1024):
    # Double-buffered inputs dominate VMEM: 2 tensors * 2 buffers * rows * d * itemsize.
    per_row = 2 * 2 * d * itemsize
    br = max(8, min(max_rows, target_bytes // max(per_row, 1)))
    br = (int(br) // 8) * 8
    br = min(br, _round_up(rows, 8))   # don't over-allocate for tiny problems
    return max(br, 8)


def normalized_euclidean_similarity(x1, x2, dim=2, eps=1e-8, block_rows=None):
    """JAX/Pallas equivalent of NormalizedEuclideanSimilarity(dim, eps).forward."""
    assert x1.shape == x2.shape, "x1/x2 must have identical shapes"
    nd = x1.ndim
    axis = dim % nd
    if axis != nd - 1:
        x1 = jnp.moveaxis(x1, axis, -1)
        x2 = jnp.moveaxis(x2, axis, -1)

    lead_shape = x1.shape[:-1]
    d = x1.shape[-1]
    r = 1
    for s in lead_shape:
        r *= s

    # Stream in native dtype (bf16 stays bf16 in HBM); f32 cast happens on VMEM tiles.
    x1f = x1.reshape(r, d)
    x2f = x2.reshape(r, d)

    out_dtype = jnp.promote_types(x1.dtype, x2.dtype)
    itemsize = max(jnp.dtype(x1f.dtype).itemsize, jnp.dtype(x2f.dtype).itemsize)
    if block_rows is None:
        block_rows = _choose_block_rows(r, d, itemsize)
    else:
        block_rows = max(8, _round_up(int(block_rows), 8))

    # Pad rows up to the tile size (padded rows compute 0 and are sliced off).
    r_pad = _round_up(r, block_rows)
    if r_pad != r:
        pad = r_pad - r
        x1f = jnp.pad(x1f, ((0, pad), (0, 0)))
        x2f = jnp.pad(x2f, ((0, pad), (0, 0)))

    grid = (r_pad // block_rows,)
    kernel = functools.partial(
        _ned_kernel,
        eps=float(eps),
        inv_n=1.0 / d,
        inv_nm1=1.0 / (d - 1),   # torch unbiased variance (requires d >= 2)
    )

    out = pl.pallas_call(
        kernel,
        out_shape=jax.ShapeDtypeStruct((r_pad, 1), out_dtype),
        grid_spec=pltpu.PrefetchScalarGridSpec(
            num_scalar_prefetch=0,
            grid=grid,
            in_specs=[
                pl.BlockSpec((block_rows, d), lambda i: (i, 0)),
                pl.BlockSpec((block_rows, d), lambda i: (i, 0)),
            ],
            out_specs=pl.BlockSpec((block_rows, 1), lambda i: (i, 0)),
        ),
        compiler_params=pltpu.CompilerParams(
            dimension_semantics=("parallel",),
            vmem_limit_bytes=32 * 1024 * 1024,
        ),
    )(x1f, x2f)

    return out[:r, 0].reshape(lead_shape)


if __name__ == "__main__":
    key = jax.random.PRNGKey(0)
    k1, k2 = jax.random.split(key)

    n_sents, trg_length, hidden = 2, 8, 32
    x1 = jax.random.normal(k1, (n_sents, trg_length, hidden), jnp.float32)
    x2 = jax.random.normal(k2, (n_sents, trg_length, hidden), jnp.float32)

    # Default (auto tile) path.
    out = normalized_euclidean_similarity(x1, x2, dim=2, eps=1e-8)
    jax.block_until_ready(out)

    # Also exercise the row-padding path with an explicit larger tile.
    out_padded = normalized_euclidean_similarity(x1, x2, dim=2, eps=1e-8, block_rows=128)
    jax.block_until_ready(out_padded)

    # Pure-JAX reference mirroring the PyTorch forward (unbiased variance, dim=2).
    def ref_fn(a, b, axis=2, eps=1e-8):
        v = lambda t: jnp.var(t, axis=axis, ddof=1)
        return jnp.sqrt(0.5 * v(a - b) / (v(a) + v(b) + eps))

    ref = ref_fn(x1, x2)

    assert out.shape == (n_sents, trg_length)
    assert out_padded.shape == (n_sents, trg_length)
    assert jnp.allclose(out, ref, atol=1e-5, rtol=1e-4)
    assert jnp.allclose(out_padded, ref, atol=1e-5, rtol=1e-4)
    print("KERNEL_OK")
</pallas_src>

<mosaic_0001>
module attributes {stable_mosaic.version = 11 : i64} {
  func.func @_ned_kernel(%arg0: i32, %arg1: memref<16x32xf32, #tpu.memory_space<vmem>>, %arg2: memref<16x32xf32, #tpu.memory_space<vmem>>, %arg3: memref<16x1xf32, #tpu.memory_space<vmem>>) attributes {dimension_semantics = [#tpu.dimension_semantics<parallel>], iteration_bounds = array<i64: 1>, scalar_prefetch = 0 : i64, scratch_operands = 0 : i64, tpu.core_type = #tpu.core_type<tc>, window_params = [{transform_indices = @transform_0, window_bounds = array<i64: 16, 32>}, {transform_indices = @transform_1, window_bounds = array<i64: 16, 32>}, {transform_indices = @transform_2, window_bounds = array<i64: 16, 1>}]} {
    %c0 = arith.constant 0 : index
    %c0_0 = arith.constant 0 : index
    %0 = vector.load %arg1[%c0, %c0_0] : memref<16x32xf32, #tpu.memory_space<vmem>>, vector<16x32xf32>
    %c0_1 = arith.constant 0 : index
    %c0_2 = arith.constant 0 : index
    %1 = vector.load %arg2[%c0_1, %c0_2] : memref<16x32xf32, #tpu.memory_space<vmem>>, vector<16x32xf32>
    %cst = arith.constant dense<0.000000e+00> : vector<16xf32>
    %2 = vector.multi_reduction <add>, %0, %cst [1] : vector<16x32xf32> to vector<16xf32>
    %3 = vector.shape_cast %2 : vector<16xf32> to vector<16x1xf32>
    %cst_3 = arith.constant 3.125000e-02 : f32
    %4 = vector.broadcast %cst_3 : f32 to vector<16x1xf32>
    %5 = arith.mulf %3, %4 : vector<16x1xf32>
    %cst_4 = arith.constant dense<0.000000e+00> : vector<16xf32>
    %6 = vector.multi_reduction <add>, %1, %cst_4 [1] : vector<16x32xf32> to vector<16xf32>
    %7 = vector.shape_cast %6 : vector<16xf32> to vector<16x1xf32>
    %cst_5 = arith.constant 3.125000e-02 : f32
    %8 = vector.broadcast %cst_5 : f32 to vector<16x1xf32>
    %9 = arith.mulf %7, %8 : vector<16x1xf32>
    %10 = vector.broadcast %5 : vector<16x1xf32> to vector<16x32xf32>
    %11 = arith.subf %0, %10 : vector<16x32xf32>
    %12 = vector.broadcast %9 : vector<16x1xf32> to vector<16x32xf32>
    %13 = arith.subf %1, %12 : vector<16x32xf32>
    %14 = arith.subf %11, %13 : vector<16x32xf32>
    %15 = arith.mulf %11, %11 : vector<16x32xf32>
    %cst_6 = arith.constant dense<0.000000e+00> : vector<16xf32>
    %16 = vector.multi_reduction <add>, %15, %cst_6 [1] : vector<16x32xf32> to vector<16xf32>
    %17 = vector.shape_cast %16 : vector<16xf32> to vector<16x1xf32>
    %cst_7 = arith.constant 0.0322580636 : f32
    %18 = vector.broadcast %cst_7 : f32 to vector<16x1xf32>
    %19 = arith.mulf %17, %18 : vector<16x1xf32>
    %20 = arith.mulf %13, %13 : vector<16x32xf32>
    %cst_8 = arith.constant dense<0.000000e+00> : vector<16xf32>
    %21 = vector.multi_reduction <add>, %20, %cst_8 [1] : vector<16x32xf32> to vector<16xf32>
    %22 = vector.shape_cast %21 : vector<16xf32> to vector<16x1xf32>
    %cst_9 = arith.constant 0.0322580636 : f32
    %23 = vector.broadcast %cst_9 : f32 to vector<16x1xf32>
    %24 = arith.mulf %22, %23 : vector<16x1xf32>
    %25 = arith.mulf %14, %14 : vector<16x32xf32>
    %cst_10 = arith.constant dense<0.000000e+00> : vector<16xf32>
    %26 = vector.multi_reduction <add>, %25, %cst_10 [1] : vector<16x32xf32> to vector<16xf32>
    %27 = vector.shape_cast %26 : vector<16xf32> to vector<16x1xf32>
    %cst_11 = arith.constant 0.0322580636 : f32
    %28 = vector.broadcast %cst_11 : f32 to vector<16x1xf32>
    %29 = arith.mulf %27, %28 : vector<16x1xf32>
    %cst_12 = arith.constant 5.000000e-01 : f32
    %30 = vector.broadcast %cst_12 : f32 to vector<16x1xf32>
    %31 = arith.mulf %30, %29 : vector<16x1xf32>
    %32 = math.sqrt %31 : vector<16x1xf32>
    %33 = arith.addf %19, %24 : vector<16x1xf32>
    %cst_13 = arith.constant 9.99999993E-9 : f32
    %34 = vector.broadcast %cst_13 : f32 to vector<16x1xf32>
    %35 = arith.addf %33, %34 : vector<16x1xf32>
    %36 = math.rsqrt %35 : vector<16x1xf32>
    %37 = arith.mulf %32, %36 : vector<16x1xf32>
    %c0_14 = arith.constant 0 : index
    %c0_15 = arith.constant 0 : index
    %38 = vector.load %arg3[%c0_14, %c0_15] : memref<16x1xf32, #tpu.memory_space<vmem>>, vector<16x1xf32>
    tpu.vector_store %arg3[%c0_14, %c0_15], %37 {strides = array<i32>} : memref<16x1xf32, #tpu.memory_space<vmem>>, vector<16x1xf32>,
    return
  }
  func.func @transform_0(%arg0: i32) -> (i32, i32) {
    %c0_i32 = arith.constant 0 : i32
    %c0_i32_0 = arith.constant 0 : i32
    return %arg0, %c0_i32 : i32, i32
  }
  func.func @transform_1(%arg0: i32) -> (i32, i32) {
    %c0_i32 = arith.constant 0 : i32
    %c0_i32_0 = arith.constant 0 : i32
    return %arg0, %c0_i32 : i32, i32
  }
  func.func @transform_2(%arg0: i32) -> (i32, i32) {
    %c0_i32 = arith.constant 0 : i32
    %c0_i32_0 = arith.constant 0 : i32
    return %arg0, %c0_i32 : i32, i32
  }
}

</mosaic_0001>

<bundles_post_ra>
// kernel: tpu_custom_call.1
= control target key start
LH: loop header
LB: loop body
LE: loop exit
PB: predicated region body
PF: predicated region fallthrough
CT: control target
= control target key end

     0   :  { %7 = vsyncpa [#allocation3], 0  ;;  %s248_s0 = inlined_call_operand.hbm [shape: f32[16,32], index: 0, kind: input, shape index: {}]   ;;  %s249_s1 = inlined_call_operand.hbm [shape: f32[16,32], index: 1, kind: input, shape index: {}]   ;;  %s250_s2 = inlined_call_operand.vmem [shape: f32[16,1], index: 2, kind: output, shape index: {}]  }
   0x1   :  { %8 = vsyncpa [#allocation5], 0  ;;  %s189_s9 = smov [#allocation2]   ;;  %s141_s13 = scalar_lea.hbm %s248_s0, 256 }
   0x2   :  { %s14_s10 = sshll.u32 %s189_s9, 4  ;;  %p142_p0 = scmp.ne.s32.totalorder %s248_s0, %s141_s13  ;;  %s15_s10 = int_to_ptr.vmem [resolvable:$true] %s14_s10 }
   0x3   :  { %p145_p1 = scmp.lt.u32.totalorder %s141_s13, %s248_s0 }
   0x5   :  { %p147_p2 = pnand %p145_p1, %p142_p0 }
   0x7   :  { %150 = shalt.err (!%p147_p2)
}
   0x8   :  { %s151_s18 = scalar_lea.vmem %s15_s10, 256  ;;  %p156_p4 = scmp.lt.s32.totalorder %s15_s10, %s15_s10 }
   0x9   :  { %p152_p3 = scmp.ne.s32.totalorder %s15_s10, %s151_s18  ;;  %p157_p5 = scmp.lt.s32.totalorder %s151_s18, %s151_s18 }
   0xb   :  { %p158_p6 = por %p157_p5, %p156_p4 }
   0xd   :  { %p159_p7 = pnand %p158_p6, %p152_p3 }
   0xf   :  { %162 = shalt.err (!%p159_p7)
}
  0x10   :  { %s190_s19 = smov 128   ;;  %s191_s20 = smov 8  }
  0x11   :  { %20 = dma.hbm_to_vmem [thread:$0]  %s248_s0, 256, %s15_s10, [#allocation3], %s190_s19, %s190_s19, %s191_s20  }
  0x12   :  { %s192_s23 = smov [#allocation4]   ;;  %s163_s27 = scalar_lea.hbm %s249_s1, 256 }
  0x13   :  { %s26_s24 = sshll.u32 %s192_s23, 4  ;;  %p164_p8 = scmp.ne.s32.totalorder %s249_s1, %s163_s27  ;;  %s27_s24 = int_to_ptr.vmem [resolvable:$true] %s26_s24 }
  0x14   :  { %p167_p9 = scmp.lt.u32.totalorder %s163_s27, %s249_s1 }
  0x16   :  { %p169_p10 = pnand %p167_p9, %p164_p8 }
  0x18   :  { %172 = shalt.err (!%p169_p10)
}
  0x19   :  { %s173_s4 = scalar_lea.vmem %s27_s24, 256  ;;  %p178_p12 = scmp.lt.s32.totalorder %s27_s24, %s27_s24 }
  0x1a   :  { %p174_p11 = scmp.ne.s32.totalorder %s27_s24, %s173_s4  ;;  %p179_p13 = scmp.lt.s32.totalorder %s173_s4, %s173_s4 }
  0x1c   :  { %p180_p0 = por %p179_p13, %p178_p12 }
  0x1e   :  { %p181_p1 = pnand %p180_p0, %p174_p11 }
  0x20   :  { %184 = shalt.err (!%p181_p1)
}
  0x21   :  { %32 = dma.hbm_to_vmem [thread:$0]  %s249_s1, 256, %s27_s24, [#allocation5], %s190_s19, %s190_s19, %s191_s20  }
  0x22   :  { %185 = dma.done.wait [#allocation3], 256  }
  0x23   :  { %186 = vsyncadd [#allocation3], 4294967040 }
  0x24   :  { %187 = dma.done.wait [#allocation5], 256  }
  0x25   :  { %188 = vsyncadd [#allocation5], 4294967040  ;;  %vm43_vm0 = vcmask 261120   ;;  %v41_v0 = vld [vmem:[#allocation4] sm:$0xff]  ;;  %v39_v1 = vld [vmem:[#allocation2] sm:$0xff]  ;;  %vm120_vm4 = vcmask 7168  }
  0x26   :  { %v42_v2 = vld [vmem:[#allocation4 + $0x8] sm:$0xff]  ;;  %v52_v3 = vsel %vm43_vm0, %v41_v0, 0.0  ;;  %v44_v4 = vsel %vm43_vm0, %v39_v1, 0.0  ;;  %v40_v5 = vld [vmem:[#allocation2 + $0x8] sm:$0xff] }
  0x27   :  { %53 = vadd.xlane.f32.xlu1 %v52_v3  ;;  %45 = vadd.xlane.f32.xlu0 %v44_v4  ;;  %v55_v6 = vsel %vm43_vm0, %v42_v2, 0.0  ;;  %v47_v7 = vsel %vm43_vm0, %v40_v5, 0.0 }
  0x2b   :  { %56 = vadd.xlane.f32.xlu1 %v55_v6  ;;  %48 = vadd.xlane.f32.xlu0 %v47_v7 }
  0xb4   :  { %v54_v8 = vpop.xlane.xlu1 %53  ;;  %v46_v9 = vpop.xlane.xlu0 %45 }
  0xb5   :  { %v58_v10 = vmul.f32 0.03125, %v54_v8  ;;  %v50_v11 = vmul.f32 0.03125, %v46_v9 }
  0xb7   :  { %v62_v12 = vsub.f32 %v41_v0, %v58_v10  ;;  %v60_v13 = vsub.f32 %v39_v1, %v50_v11 }
  0xb8   :  { %v57_v14 = vpop.xlane.xlu1 %56  ;;  %v49_v15 = vpop.xlane.xlu0 %48 }
  0xb9   :  { %v59_v16 = vmul.f32 0.03125, %v57_v14  ;;  %v51_v17 = vmul.f32 0.03125, %v49_v15  ;;  %v66_v18 = vmul.f32 %v60_v13, %v60_v13  ;;  %v64_v19 = vsub.f32 %v60_v13, %v62_v12 }
  0xba   :  { %v76_v28 = vmul.f32 %v62_v12, %v62_v12 }
  0xbb   :  { %v63_v20 = vsub.f32 %v42_v2, %v59_v16  ;;  %v61_v21 = vsub.f32 %v40_v5, %v51_v17  ;;  %v68_v22 = vsel %vm43_vm0, %v66_v18, 0.0  ;;  %v86_v23 = vmul.f32 %v64_v19, %v64_v19 }
  0xbc   :  { %69 = vadd.xlane.f32.xlu0 %v68_v22  ;;  %v78_v30 = vsel %vm43_vm0, %v76_v28, 0.0 }
  0xbd   :  { %v67_v24 = vmul.f32 %v61_v21, %v61_v21  ;;  %v65_v25 = vsub.f32 %v61_v21, %v63_v20  ;;  %v88_v26 = vsel %vm43_vm0, %v86_v23, 0.0  ;;  %v77_v32 = vmul.f32 %v63_v20, %v63_v20 }
  0xbf   :  { %v71_v27 = vsel %vm43_vm0, %v67_v24, 0.0  ;;  %v87_v29 = vmul.f32 %v65_v25, %v65_v25  ;;  %v81_v33 = vsel %vm43_vm0, %v77_v32, 0.0 }
  0xc0   :  { %89 = vadd.xlane.f32.xlu0 %v88_v26  ;;  %72 = vadd.xlane.f32.xlu1 %v71_v27 }
  0xc1   :  { %v91_v31 = vsel %vm43_vm0, %v87_v29, 0.0 }
  0xc4   :  { %79 = vadd.xlane.f32.xlu0 %v78_v30  ;;  %92 = vadd.xlane.f32.xlu1 %v91_v31 }
  0xc8   :  { %82 = vadd.xlane.f32.xlu1 %v81_v33 }
 0x149   :  { %v70_v34 = vpop.xlane.xlu0 %69 }
 0x14a   :  { %v74_v42 = vmul.f32 0.032258064, %v70_v34 }
 0x14d   :  { %v73_v35 = vpop.xlane.xlu1 %72  ;;  %v90_v36 = vpop.xlane.xlu0 %89 }
 0x14e   :  { %v94_v37 = vmul.f32 0.032258064, %v90_v36  ;;  %v75_v47 = vmul.f32 0.032258064, %v73_v35 }
 0x150   :  { %v96_v38 = vmul.f32 0.5, %v94_v37 }
 0x151   :  { %v93_v39 = vpop.xlane.xlu1 %92  ;;  %v80_v40 = vpop.xlane.xlu0 %79 }
 0x152   :  { %133 = vrsqrt.f32 %v96_v38  ;;  %v95_v41 = vmul.f32 0.032258064, %v93_v39  ;;  %v84_v43 = vmul.f32 0.032258064, %v80_v40  ;;  %vm100_vm1 = vcmp.eq.f32.partialorder %v96_v38, inf }
 0x153   :  { %v103_v56 = vand.u32 2147483648, %v96_v38  ;;  %vm102_vm2 = vcmp.eq.f32.partialorder %v96_v38, 0.0 }
 0x154   :  { %v97_v44 = vmul.f32 0.5, %v95_v41  ;;  %v112_v45 = vadd.f32 %v84_v43, %v74_v42 }
 0x155   :  { %v83_v46 = vpop.xlane.xlu1 %82 }
 0x156   :  { %135 = vrsqrt.f32 %v97_v44  ;;  %v114_v48 = vadd.f32 1e-08, %v112_v45  ;;  %v85_v49 = vmul.f32 0.032258064, %v83_v46  ;;  %vm107_vm3 = vcmp.eq.f32.partialorder %v97_v44, inf }
 0x157   :  { %v110_v62 = vand.u32 2147483648, %v97_v44  ;;  %vm109_vm5 = vcmp.eq.f32.partialorder %v97_v44, 0.0 }
 0x158   :  { %137 = vrsqrt.f32 %v114_v48  ;;  %v113_v50 = vadd.f32 %v85_v49, %v75_v47 }
 0x15a   :  { %v115_v51 = vadd.f32 1e-08, %v113_v50 }
 0x15c   :  { %v134_v52 = vpop.eup %133  ;;  %139 = vrsqrt.f32 %v115_v51 }
 0x15d   :  { %v99_v53 = vmul.f32 %v134_v52, %v96_v38 }
 0x15f   :  { %v101_v55 = vsel %vm100_vm1, %v96_v38, %v99_v53 }
 0x160   :  { %v136_v54 = vpop.eup %135  ;;  %v104_v59 = vsel %vm102_vm2, %v103_v56, %v101_v55 }
 0x161   :  { %v106_v57 = vmul.f32 %v136_v54, %v97_v44 }
 0x162   :  { %v138_v58 = vpop.eup %137 }
 0x163   :  { %v118_v60 = vmul.f32 %v138_v58, %v104_v59  ;;  %v108_v61 = vsel %vm107_vm3, %v97_v44, %v106_v57 }
 0x164   :  { %v111_v0 = vsel %vm109_vm5, %v110_v62, %v108_v61 }
 0x165   :  { %121 = vst.msk [vmem:[%s250_s2] sm:$0xff] %vm120_vm4, %v118_v60 }
 0x166   :  { %v140_v63 = vpop.eup %139 }
 0x167   :  { %v119_v1 = vmul.f32 %v140_v63, %v111_v0 }
 0x169   :  { %122 = vst.msk [vmem:[%s250_s2 + $0x8] sm:$0xff] %vm120_vm4, %v119_v1 }
 0x16a   :  { %127 = vsyncpa [#allocation3], 1 }
 0x16b   :  { %128 = vsyncpa [#allocation5], 1 }

</bundles_post_ra>
